<compile_context>
chip_gen: v7x
topology: tpu7x:2x2x1
jax: 0.10.0
libtpu: 0.0.40
codegen_flags: <defaults>
</compile_context>

<pallas_src>
import functools

import jax
import jax.numpy as jnp
from jax.experimental import pallas as pl
from jax.experimental.pallas import tpu as pltpu

F_PAD = 128   # padded feature width (input / hidden / output)
HID = 64      # true hidden width
F_IN = 9      # true input / output width


def dqn_kernel(x_ref, w_ref, b_ref, o_ref):
    # x_ref: (TB, 128); w_ref: (3, 128, 128); b_ref: (3, 1, 128); o_ref: (TB, 128)
    x = x_ref[...]

    h1 = jnp.dot(x, w_ref[0], preferred_element_type=jnp.float32) + b_ref[0]
    h1 = jnp.maximum(h1, 0.0)

    h2 = jnp.dot(h1, w_ref[1], preferred_element_type=jnp.float32) + b_ref[1]
    h2 = jnp.maximum(h2, 0.0)

    out = jnp.dot(h2, w_ref[2], preferred_element_type=jnp.float32) + b_ref[2]
    o_ref[...] = out.astype(o_ref.dtype)


def _round_up(n, m):
    return ((n + m - 1) // m) * m


def _pack_params(p):
    """Zero-pad each layer to (128,128)/(1,128) and stack into two slabs."""
    f32 = jnp.float32
    w1 = jnp.zeros((F_PAD, F_PAD), f32).at[:F_IN, :HID].set(p["w1"])
    w2 = jnp.zeros((F_PAD, F_PAD), f32).at[:HID, :HID].set(p["w2"])
    w3 = jnp.zeros((F_PAD, F_PAD), f32).at[:HID, :F_IN].set(p["w3"])
    b1 = jnp.zeros((1, F_PAD), f32).at[:, :HID].set(p["b1"])
    b2 = jnp.zeros((1, F_PAD), f32).at[:, :HID].set(p["b2"])
    b3 = jnp.zeros((1, F_PAD), f32).at[:, :F_IN].set(p["b3"])
    w_slab = jnp.stack([w1, w2, w3], axis=0)   # (3, 128, 128)
    b_slab = jnp.stack([b1, b2, b3], axis=0)   # (3, 1, 128)
    return w_slab, b_slab


def dqn_forward(x, params, block_rows=1024):
    """x: (B, 9) float32; params: dict of (in,out)-layout weights and (1,out) biases.

    Returns (B, 9) float32, identical math to the PyTorch module.
    """
    B, fin = x.shape
    assert fin == F_IN, fin

    w_slab, b_slab = _pack_params(params)

    # Batch tile: multiple of 8 sublanes; cap at block_rows.  Double-buffered
    # x+out at 1024 rows is ~2 MiB f32 -> comfortably inside the default
    # scoped-VMEM budget on v5e/v6e/v7x.
    tb = min(block_rows, _round_up(B, 8))
    b_pad = _round_up(B, tb)
    grid = (pl.cdiv(b_pad, tb),)

    # Lane-dense, zero-padded input slab (B_pad, 128) via a single fused pad.
    x_pad = jnp.pad(x.astype(jnp.float32),
                    ((0, b_pad - B), (0, F_PAD - F_IN)))

    flops = 2 * 3 * b_pad * F_PAD * F_PAD
    bytes_accessed = 4 * (2 * b_pad * F_PAD            # x in + out
                          + 3 * F_PAD * F_PAD          # weights
                          + 3 * F_PAD)                 # biases

    out_pad = pl.pallas_call(
        dqn_kernel,
        out_shape=jax.ShapeDtypeStruct((b_pad, F_PAD), jnp.float32),
        grid=grid,
        in_specs=[
            # Batch-streamed activations.
            pl.BlockSpec((tb, F_PAD), lambda i: (i, 0)),
            # Weight / bias slabs: constant index_map -> VMEM-resident across steps.
            pl.BlockSpec((3, F_PAD, F_PAD), lambda i: (0, 0, 0)),
            pl.BlockSpec((3, 1, F_PAD), lambda i: (0, 0, 0)),
        ],
        out_specs=pl.BlockSpec((tb, F_PAD), lambda i: (i, 0)),
        compiler_params=pltpu.CompilerParams(
            dimension_semantics=("parallel",)),
        cost_estimate=pl.CostEstimate(flops=flops, transcendentals=0,
                                      bytes_accessed=bytes_accessed),
    )(x_pad, w_slab, b_slab)

    # Slice back to the true batch / 9 Q-values (padded cols are exact zeros).
    return out_pad[:B, :F_IN]


def init_params(key):
    """Deterministic init mimicking PyTorch Linear default (uniform +/- 1/sqrt(fan_in))."""
    def linear(key, fan_in, fan_out):
        kw, kb = jax.random.split(key)
        bound = 1.0 / jnp.sqrt(fan_in)
        # Stored as (in, out) so the kernel does x @ W.
        w = jax.random.uniform(kw, (fan_in, fan_out), jnp.float32, -bound, bound)
        b = jax.random.uniform(kb, (1, fan_out), jnp.float32, -bound, bound)
        return w, b

    k1, k2, k3 = jax.random.split(key, 3)
    w1, b1 = linear(k1, F_IN, HID)
    w2, b2 = linear(k2, HID, HID)
    w3, b3 = linear(k3, HID, F_IN)
    return dict(w1=w1, b1=b1, w2=w2, b2=b2, w3=w3, b3=b3)


def dqn_reference(x, p):
    """Pure-JAX reference of the same forward pass."""
    h1 = jnp.maximum(x @ p["w1"] + p["b1"], 0.0)
    h2 = jnp.maximum(h1 @ p["w2"] + p["b2"], 0.0)
    return h2 @ p["w3"] + p["b3"]


if __name__ == "__main__":
    key = jax.random.PRNGKey(0)
    kx, kp = jax.random.split(key)

    params = init_params(kp)

    # jit-compiled forward: pad / pallas_call / slice fuse into one program.
    fwd = jax.jit(dqn_forward, static_argnames=("block_rows",))

    # Small per-step batch (typical RL env step): board states in {-1, 0, 1}.
    batch = 8
    x = jax.random.randint(kx, (batch, 9), -1, 2).astype(jnp.float32)

    out = jax.block_until_ready(fwd(x, params))
    ref = dqn_reference(x, params)
    assert out.shape == (batch, 9), out.shape
    assert jnp.allclose(out, ref, atol=1e-5, rtol=1e-5), "mismatch vs reference (B=8)"

    # Also exercise the multi-tile pipelined path (grid > 1, resident weights).
    kx2 = jax.random.fold_in(kx, 1)
    big = jax.random.randint(kx2, (300, 9), -1, 2).astype(jnp.float32)
    out_big = jax.block_until_ready(fwd(big, params, block_rows=128))
    assert out_big.shape == (300, 9)
    assert jnp.allclose(out_big, dqn_reference(big, params), atol=1e-5, rtol=1e-5), \
        "mismatch vs reference (B=300, tiled)"

    print("KERNEL_OK")
</pallas_src>

<mosaic_0001>
module attributes {stable_mosaic.version = 11 : i64} {
  func.func @dqn_kernel(%arg0: i32, %arg1: memref<8x128xf32, #tpu.memory_space<vmem>>, %arg2: memref<3x128x128xf32, #tpu.memory_space<vmem>>, %arg3: memref<3x1x128xf32, #tpu.memory_space<vmem>>, %arg4: memref<8x128xf32, #tpu.memory_space<vmem>>) attributes {dimension_semantics = [#tpu.dimension_semantics<parallel>], iteration_bounds = array<i64: 1>, scalar_prefetch = 0 : i64, scratch_operands = 0 : i64, tpu.core_type = #tpu.core_type<tc>, window_params = [{transform_indices = @transform_0, window_bounds = array<i64: 8, 128>}, {pipeline_mode = #tpu.pipeline_mode<synchronous>, transform_indices = @transform_1, window_bounds = array<i64: 3, 128, 128>}, {pipeline_mode = #tpu.pipeline_mode<synchronous>, transform_indices = @transform_2, window_bounds = array<i64: 3, 1, 128>}, {transform_indices = @transform_3, window_bounds = array<i64: 8, 128>}]} {
    %c0 = arith.constant 0 : index
    %c0_0 = arith.constant 0 : index
    %0 = vector.load %arg1[%c0, %c0_0] : memref<8x128xf32, #tpu.memory_space<vmem>>, vector<8x128xf32>
    %c0_1 = arith.constant 0 : index
    %c0_2 = arith.constant 0 : index
    %c0_3 = arith.constant 0 : index
    %1 = vector.load %arg2[%c0_1, %c0_2, %c0_3] : memref<3x128x128xf32, #tpu.memory_space<vmem>>, vector<1x128x128xf32>
    %2 = vector.shape_cast %1 : vector<1x128x128xf32> to vector<128x128xf32>
    %cst = arith.constant dense<0.000000e+00> : vector<8x128xf32>
    %3 = tpu.matmul %0, %2, %cst {dimension_numbers = #tpu.dot_dimension_numbers<[1], [0], [0], [1], [0, 0, 1, 1], [], []>} : vector<8x128xf32>, vector<128x128xf32>, vector<8x128xf32> -> vector<8x128xf32>
    %c0_4 = arith.constant 0 : index
    %c0_5 = arith.constant 0 : index
    %c0_6 = arith.constant 0 : index
    %4 = vector.load %arg3[%c0_4, %c0_5, %c0_6] : memref<3x1x128xf32, #tpu.memory_space<vmem>>, vector<1x1x128xf32>
    %5 = vector.shape_cast %4 : vector<1x1x128xf32> to vector<1x128xf32>
    %6 = vector.broadcast %5 : vector<1x128xf32> to vector<8x128xf32>
    %7 = arith.addf %3, %6 : vector<8x128xf32>
    %cst_7 = arith.constant 0.000000e+00 : f32
    %8 = vector.broadcast %cst_7 : f32 to vector<8x128xf32>
    %9 = arith.maximumf %7, %8 : vector<8x128xf32>
    %c1 = arith.constant 1 : index
    %c0_8 = arith.constant 0 : index
    %c0_9 = arith.constant 0 : index
    %10 = vector.load %arg2[%c1, %c0_8, %c0_9] : memref<3x128x128xf32, #tpu.memory_space<vmem>>, vector<1x128x128xf32>
    %11 = vector.shape_cast %10 : vector<1x128x128xf32> to vector<128x128xf32>
    %cst_10 = arith.constant dense<0.000000e+00> : vector<8x128xf32>
    %12 = tpu.matmul %9, %11, %cst_10 {dimension_numbers = #tpu.dot_dimension_numbers<[1], [0], [0], [1], [0, 0, 1, 1], [], []>} : vector<8x128xf32>, vector<128x128xf32>, vector<8x128xf32> -> vector<8x128xf32>
    %c1_11 = arith.constant 1 : index
    %c0_12 = arith.constant 0 : index
    %c0_13 = arith.constant 0 : index
    %13 = vector.load %arg3[%c1_11, %c0_12, %c0_13] : memref<3x1x128xf32, #tpu.memory_space<vmem>>, vector<1x1x128xf32>
    %14 = vector.shape_cast %13 : vector<1x1x128xf32> to vector<1x128xf32>
    %15 = vector.broadcast %14 : vector<1x128xf32> to vector<8x128xf32>
    %16 = arith.addf %12, %15 : vector<8x128xf32>
    %cst_14 = arith.constant 0.000000e+00 : f32
    %17 = vector.broadcast %cst_14 : f32 to vector<8x128xf32>
    %18 = arith.maximumf %16, %17 : vector<8x128xf32>
    %c2 = arith.constant 2 : index
    %c0_15 = arith.constant 0 : index
    %c0_16 = arith.constant 0 : index
    %19 = vector.load %arg2[%c2, %c0_15, %c0_16] : memref<3x128x128xf32, #tpu.memory_space<vmem>>, vector<1x128x128xf32>
    %20 = vector.shape_cast %19 : vector<1x128x128xf32> to vector<128x128xf32>
    %cst_17 = arith.constant dense<0.000000e+00> : vector<8x128xf32>
    %21 = tpu.matmul %18, %20, %cst_17 {dimension_numbers = #tpu.dot_dimension_numbers<[1], [0], [0], [1], [0, 0, 1, 1], [], []>} : vector<8x128xf32>, vector<128x128xf32>, vector<8x128xf32> -> vector<8x128xf32>
    %c2_18 = arith.constant 2 : index
    %c0_19 = arith.constant 0 : index
    %c0_20 = arith.constant 0 : index
    %22 = vector.load %arg3[%c2_18, %c0_19, %c0_20] : memref<3x1x128xf32, #tpu.memory_space<vmem>>, vector<1x1x128xf32>
    %23 = vector.shape_cast %22 : vector<1x1x128xf32> to vector<1x128xf32>
    %24 = vector.broadcast %23 : vector<1x128xf32> to vector<8x128xf32>
    %25 = arith.addf %21, %24 : vector<8x128xf32>
    %c0_21 = arith.constant 0 : index
    %c0_22 = arith.constant 0 : index
    %26 = vector.load %arg4[%c0_21, %c0_22] : memref<8x128xf32, #tpu.memory_space<vmem>>, vector<8x128xf32>
    tpu.vector_store %arg4[%c0_21, %c0_22], %25 {strides = array<i32>} : memref<8x128xf32, #tpu.memory_space<vmem>>, vector<8x128xf32>,
    return
  }
  func.func @transform_0(%arg0: i32) -> (i32, i32) {
    %c0_i32 = arith.constant 0 : i32
    %c0_i32_0 = arith.constant 0 : i32
    return %arg0, %c0_i32 : i32, i32
  }
  func.func @transform_1(%arg0: i32) -> (i32, i32, i32) {
    %c0_i32 = arith.constant 0 : i32
    %c0_i32_0 = arith.constant 0 : i32
    %c0_i32_1 = arith.constant 0 : i32
    %c0_i32_2 = arith.constant 0 : i32
    return %c0_i32, %c0_i32_0, %c0_i32_1 : i32, i32, i32
  }
  func.func @transform_2(%arg0: i32) -> (i32, i32, i32) {
    %c0_i32 = arith.constant 0 : i32
    %c0_i32_0 = arith.constant 0 : i32
    %c0_i32_1 = arith.constant 0 : i32
    %c0_i32_2 = arith.constant 0 : i32
    return %c0_i32, %c0_i32_0, %c0_i32_1 : i32, i32, i32
  }
  func.func @transform_3(%arg0: i32) -> (i32, i32) {
    %c0_i32 = arith.constant 0 : i32
    %c0_i32_0 = arith.constant 0 : i32
    return %arg0, %c0_i32 : i32, i32
  }
}

</mosaic_0001>

<bundles_post_ra>
// kernel: dqn_forward.1
= control target key start
LH: loop header
LB: loop body
LE: loop exit
PB: predicated region body
PF: predicated region fallthrough
CT: control target
= control target key end

     0   :  { %v609_v3 = vmov 0.0|0.0   ;;  %vm610_vm0 = vmmov 0   ;;  %v611_v6 = vmov 0.0   ;;  %s831_s0 = inlined_call_operand.vmem [shape: f32[8,128], index: 0, kind: input, shape index: {}]   ;;  %s832_s1 = inlined_call_operand.vmem [shape: f32[3,128,128], index: 1, kind: input, shape index: {}]   ;;  %s833_s2 = inlined_call_operand.vmem [shape: f32[3,1,128], index: 2, kind: input, shape index: {}]   ;;  %s834_s3 = inlined_call_operand.hbm [shape: f32[8,128], index: 3, kind: output, shape index: {}]  }
   0x1   :  { %v16_v0 = vld [vmem:[%s832_s1] sm:$0xff]  ;;  %v17_v1 = vld [vmem:[%s832_s1 + $0x8] sm:$0xff]  ;;  %v18_v2 = vld [vmem:[%s832_s1 + $0x10] sm:$0xff]  ;;  %509 = vmatprep.subr.bf16.mxu0 %v609_v3  ;;  %436 = vmatprep.mubr.msk.f32.mxu0 %vm610_vm0, %v611_v6 }
   0x2   :  { %v510_v4 = vpack.c.bf16 %v17_v1, %v16_v0  ;;  %v19_v5 = vld [vmem:[%s832_s1 + $0x18] sm:$0xff]  ;;  %533 = vmatprep.subr.bf16.mxu1 %v609_v3  ;;  %471 = vmatprep.mubr.msk.f32.mxu1 %vm610_vm0, %v611_v6  ;;  %v20_v8 = vld [vmem:[%s832_s1 + $0x20] sm:$0xff]  ;;  %v21_v9 = vld [vmem:[%s832_s1 + $0x28] sm:$0xff] }
   0x3   :  { %v513_v7 = vpack.c.bf16 %v19_v5, %v18_v2  ;;  %v317_v10 = vld [vmem:[%s832_s1 + $0x80] sm:$0xff]  ;;  %v318_v11 = vld [vmem:[%s832_s1 + $0x88] sm:$0xff]  ;;  %v319_v12 = vld [vmem:[%s832_s1 + $0x90] sm:$0xff]  ;;  %v516_v14 = vpack.c.bf16 %v21_v9, %v20_v8 }
   0x4   :  { %511 = vmatpush3.bf16.msra.mxu0 %v510_v4  ;;  %v320_v13 = vld [vmem:[%s832_s1 + $0x98] sm:$0xff]  ;;  %v534_v15 = vpack.c.bf16 %v318_v11, %v317_v10  ;;  %v22_v16 = vld [vmem:[%s832_s1 + $0x30] sm:$0xff]  ;;  %v321_v19 = vld [vmem:[%s832_s1 + $0xa0] sm:$0xff] }
   0x5   :  { %512 = vmatprep.subr.bf16.mxu0 %v609_v3  ;;  %v23_v17 = vld [vmem:[%s832_s1 + $0x38] sm:$0xff]  ;;  %v537_v18 = vpack.c.bf16 %v320_v13, %v319_v12  ;;  %v322_v20 = vld [vmem:[%s832_s1 + $0xa8] sm:$0xff] }
   0x6   :  { %535 = vmatpush3.bf16.msra.mxu1 %v534_v15 }
   0x7   :  { %536 = vmatprep.subr.bf16.mxu1 %v609_v3 }
   0x8   :  { %514 = vmatpush3.bf16.msra.mxu0 %v513_v7 }
   0x9   :  { %515 = vmatprep.subr.bf16.mxu0 %v609_v3 }
   0xa   :  { %8 = vsyncpa [#allocation3], 0  ;;  %v519_v21 = vpack.c.bf16 %v23_v17, %v22_v16  ;;  %v24_v22 = vld [vmem:[%s832_s1 + $0x40] sm:$0xff]  ;;  %v25_v23 = vld [vmem:[%s832_s1 + $0x48] sm:$0xff]  ;;  %538 = vmatpush3.bf16.msra.mxu1 %v537_v18  ;;  %v540_v24 = vpack.c.bf16 %v322_v20, %v321_v19  ;;  %s612_s6 = smov [#allocation2]  }
   0xb   :  { %539 = vmatprep.subr.bf16.mxu1 %v609_v3  ;;  %v323_v25 = vld [vmem:[%s832_s1 + $0xb0] sm:$0xff]  ;;  %v324_v26 = vld [vmem:[%s832_s1 + $0xb8] sm:$0xff]  ;;  %v522_v27 = vpack.c.bf16 %v25_v23, %v24_v22  ;;  %v325_v31 = vld [vmem:[%s832_s1 + $0xc0] sm:$0xff]  ;;  %s308_s7 = sshll.u32 %s612_s6, 4  ;;  %s309_s7 = int_to_ptr.vmem [resolvable:$true] %s308_s7 }
   0xc   :  { %517 = vmatpush3.bf16.msra.mxu0 %v516_v14  ;;  %v26_v28 = vld [vmem:[%s832_s1 + $0x50] sm:$0xff]  ;;  %v27_v29 = vld [vmem:[%s832_s1 + $0x58] sm:$0xff]  ;;  %v543_v30 = vpack.c.bf16 %v324_v26, %v323_v25  ;;  %v326_v32 = vld [vmem:[%s832_s1 + $0xc8] sm:$0xff]  ;;  %p590_p1 = scmp.lt.s32.totalorder %s309_s7, %s309_s7 }
   0xd   :  { %518 = vmatprep.subr.bf16.mxu0 %v609_v3  ;;  %v525_v33 = vpack.c.bf16 %v27_v29, %v26_v28  ;;  %v28_v34 = vld [vmem:[%s832_s1 + $0x60] sm:$0xff]  ;;  %v29_v35 = vld [vmem:[%s832_s1 + $0x68] sm:$0xff]  ;;  %v546_v36 = vpack.c.bf16 %v326_v32, %v325_v31  ;;  %v327_v37 = vld [vmem:[%s832_s1 + $0xd0] sm:$0xff] }
   0xe   :  { %541 = vmatpush3.bf16.msra.mxu1 %v540_v24  ;;  %v328_v38 = vld [vmem:[%s832_s1 + $0xd8] sm:$0xff]  ;;  %v528_v39 = vpack.c.bf16 %v29_v35, %v28_v34  ;;  %v30_v40 = vld [vmem:[%s832_s1 + $0x70] sm:$0xff]  ;;  %v329_v43 = vld [vmem:[%s832_s1 + $0xe0] sm:$0xff] }
   0xf   :  { %542 = vmatprep.subr.bf16.mxu1 %v609_v3  ;;  %v31_v41 = vld [vmem:[%s832_s1 + $0x78] sm:$0xff]  ;;  %v549_v42 = vpack.c.bf16 %v328_v38, %v327_v37  ;;  %v330_v44 = vld [vmem:[%s832_s1 + $0xe8] sm:$0xff]  ;;  %v15_v47 = vld [vmem:[%s831_s0] sm:$0xff] }
  0x10   :  { %520 = vmatpush3.bf16.msra.mxu0 %v519_v21  ;;  %v531_v45 = vpack.c.bf16 %v31_v41, %v30_v40  ;;  %v552_v46 = vpack.c.bf16 %v330_v44, %v329_v43  ;;  %v331_v48 = vld [vmem:[%s832_s1 + $0xf0] sm:$0xff]  ;;  %v332_v49 = vld [vmem:[%s832_s1 + $0xf8] sm:$0xff]  ;;  %v335_v51 = vld [vmem:[%s832_s1 + $0x100] sm:$0xff] }
  0x11   :  { %521 = vmatprep.subr.bf16.mxu0 %v609_v3  ;;  %v555_v50 = vpack.c.bf16 %v332_v49, %v331_v48  ;;  %v336_v52 = vld [vmem:[%s832_s1 + $0x108] sm:$0xff]  ;;  %v337_v53 = vld [vmem:[%s832_s1 + $0x110] sm:$0xff]  ;;  %v338_v55 = vld [vmem:[%s832_s1 + $0x118] sm:$0xff] }
  0x12   :  { %544 = vmatpush3.bf16.msra.mxu1 %v543_v30  ;;  %v558_v54 = vpack.c.bf16 %v336_v52, %v335_v51  ;;  %v561_v56 = vpack.c.bf16 %v338_v55, %v337_v53  ;;  %v339_v57 = vld [vmem:[%s832_s1 + $0x120] sm:$0xff]  ;;  %v340_v58 = vld [vmem:[%s832_s1 + $0x128] sm:$0xff]  ;;  %v341_v60 = vld [vmem:[%s832_s1 + $0x130] sm:$0xff] }
  0x13   :  { %545 = vmatprep.subr.bf16.mxu1 %v609_v3  ;;  %v564_v59 = vpack.c.bf16 %v340_v58, %v339_v57  ;;  %v342_v61 = vld [vmem:[%s832_s1 + $0x138] sm:$0xff]  ;;  %v343_v63 = vld [vmem:[%s832_s1 + $0x140] sm:$0xff]  ;;  %v344_v0 = vld [vmem:[%s832_s1 + $0x148] sm:$0xff] }
  0x14   :  { %523 = vmatpush3.bf16.msra.mxu0 %v522_v27  ;;  %v567_v62 = vpack.c.bf16 %v342_v61, %v341_v60  ;;  %v570_v1 = vpack.c.bf16 %v344_v0, %v343_v63  ;;  %v345_v2 = vld [vmem:[%s832_s1 + $0x150] sm:$0xff]  ;;  %v346_v4 = vld [vmem:[%s832_s1 + $0x158] sm:$0xff]  ;;  %v348_v7 = vld [vmem:[%s832_s1 + $0x168] sm:$0xff] }
  0x15   :  { %524 = vmatprep.subr.bf16.mxu0 %v609_v3  ;;  %v573_v5 = vpack.c.bf16 %v346_v4, %v345_v2  ;;  %v316_v9 = vld [vmem:[%s833_s2] ss:$0 sm:$0xff]  ;;  %v349_v14 = vld [vmem:[%s832_s1 + $0x170] sm:$0xff]  ;;  %v350_v15 = vld [vmem:[%s832_s1 + $0x178] sm:$0xff] }
  0x16   :  { %547 = vmatpush3.bf16.msra.mxu1 %v546_v36  ;;  %v579_v16 = vpack.c.bf16 %v350_v15, %v349_v14  ;;  %v352_v21 = vld [vmem:[%s833_s2 + $0x2] ss:$0 sm:$0xff] }
  0x17   :  { %548 = vmatprep.subr.bf16.mxu1 %v609_v3 }
  0x18   :  { %526 = vmatpush3.bf16.msra.mxu0 %v525_v33 }
  0x19   :  { %527 = vmatprep.subr.bf16.mxu0 %v609_v3 }
  0x1a   :  { %550 = vmatpush3.bf16.msra.mxu1 %v549_v42 }
  0x1b   :  { %551 = vmatprep.subr.bf16.mxu1 %v609_v3 }
  0x1c   :  { %529 = vmatpush3.bf16.msra.mxu0 %v528_v39 }
  0x1d   :  { %530 = vmatprep.subr.bf16.mxu0 %v609_v3 }
  0x1e   :  { %553 = vmatpush3.bf16.msra.mxu1 %v552_v46 }
  0x1f   :  { %554 = vmatprep.subr.bf16.mxu1 %v609_v3 }
  0x20   :  { %532 = vmatpush3.bf16.msra.mxu0 %v531_v45 }
  0x21   :  { %557 = vmatprep.subr.bf16.mxu0 %v609_v3 }
  0x22   :  { %556 = vmatpush3.bf16.msra.mxu1 %v555_v50 }
  0x23   :  { %437 = vmatmul.mubr.f32.vlgmr.msra.gmra.mrb[0].mxu0 %v15_v47 }
  0x24   :  { %506 = vmatprep.mubr.msk.f32.mxu0 %vm610_vm0, %v611_v6  ;;  %559 = vmatpush3.bf16.msra.mxu0 %v558_v54  ;;  %v347_v6 = vld [vmem:[%s832_s1 + $0x160] sm:$0xff]  ;;  %s585_s1 = scalar_lea.vmem %s309_s7, 128 }
  0x25   :  { %560 = vmatprep.subr.bf16.mxu0 %v609_v3  ;;  %v576_v8 = vpack.c.bf16 %v348_v7, %v347_v6  ;;  %p586_p0 = scmp.ne.s32.totalorder %s309_s7, %s585_s1  ;;  %p591_p2 = scmp.lt.s32.totalorder %s585_s1, %s585_s1 }
  0x27   :  { %p592_p3 = por %p591_p2, %p590_p1 }
  0x28   :  { %562 = vmatpush3.bf16.msra.mxu0 %v561_v56 }
  0x29   :  { %563 = vmatprep.subr.bf16.mxu0 %v609_v3  ;;  %p593_p4 = pnand %p592_p3, %p586_p0 }
  0x2c   :  { %565 = vmatpush3.bf16.msra.mxu0 %v564_v59 }
  0x2d   :  { %566 = vmatprep.subr.bf16.mxu0 %v609_v3 }
  0x30   :  { %568 = vmatpush3.bf16.msra.mxu0 %v567_v62 }
  0x31   :  { %569 = vmatprep.subr.bf16.mxu0 %v609_v3 }
  0x34   :  { %571 = vmatpush3.bf16.msra.mxu0 %v570_v1 }
  0x35   :  { %572 = vmatprep.subr.bf16.mxu0 %v609_v3 }
  0x38   :  { %574 = vmatpush3.bf16.msra.mxu0 %v573_v5 }
  0x39   :  { %575 = vmatprep.subr.bf16.mxu0 %v609_v3 }
  0x3c   :  { %577 = vmatpush3.bf16.msra.mxu0 %v576_v8 }
  0x3d   :  { %578 = vmatprep.subr.bf16.mxu0 %v609_v3  ;;  %v334_v3 = vld [vmem:[%s833_s2 + $0x1] ss:$0 sm:$0xff] }
  0x40   :  { %580 = vmatpush3.bf16.msra.mxu0 %v579_v16 }
  0xf6   :  { %v105_v10 = vpop.f32.mrb[0].mxu0 }
  0xf7   :  { %v106_v11 = vadd.f32 %v316_v9, %v105_v10  ;;  %v438_v12 = vpop.f32.mrb[1].mxu0 }
  0xf9   :  { %v109_v13 = vmax.f32 %v106_v11, 0.0 }
  0xfb   :  { %472 = vmatmul.mubr.f32.vlgmr.msra.gmra.mrb[0].mxu1 %v109_v13 }
 0x1ce   :  { %v201_v17 = vpop.f32.mrb[0].mxu1 }
 0x1cf   :  { %v202_v18 = vadd.f32 %v334_v3, %v201_v17  ;;  %v473_v19 = vpop.f32.mrb[1].mxu1 }
 0x1d1   :  { %v205_v20 = vmax.f32 %v202_v18, 0.0 }
 0x1d3   :  { %507 = vmatmul.mubr.f32.vlgmr.msra.gmra.mrb[2].mxu0 %v205_v20 }
 0x2a6   :  { %v297_v22 = vpop.f32.mrb[2].mxu0 }
 0x2a7   :  { %v298_v23 = vadd.f32 %v352_v21, %v297_v22  ;;  %v508_v24 = vpop.f32.mrb[3].mxu0 }
 0x2a9   :  { %301 = vst [vmem:[#allocation2] sm:$0xff] %v298_v23 }
 0x2aa   :  { %596 = shalt.err (!%p593_p4)
}
 0x2ab   :  { %s597_s10 = scalar_lea.hbm %s834_s3, 128 }
 0x2ac   :  { %p598_p5 = scmp.ne.s32.totalorder %s834_s3, %s597_s10  ;;  %p601_p6 = scmp.lt.u32.totalorder %s597_s10, %s834_s3 }
 0x2ae   :  { %p603_p7 = pnand %p601_p6, %p598_p5 }
 0x2b0   :  { %606 = shalt.err (!%p603_p7)
}
 0x2b1   :  { %311 = dma.vmem_to_hbm [thread:$0]  %s309_s7, 128, %s834_s3, [#allocation3]  }
 0x2b2   :  { %607 = dma.done.wait [#allocation3], 128  }
 0x2b3   :  { %608 = vsyncadd [#allocation3], 4294967168 }
 0x2b4   :  { %315 = vsyncpa [#allocation3], 1 }

</bundles_post_ra>
